<compile_context>
chip_gen: v7x
topology: tpu7x:2x2x1
jax: 0.10.0
libtpu: 0.0.40
codegen_flags: <defaults>
</compile_context>

<pallas_src>
import functools

import jax
import jax.numpy as jnp
from jax.experimental import pallas as pl
from jax.experimental.pallas import tpu as pltpu

D_IN = 7      # input / output feature size
D_HID = 21    # hidden size of encoder/decoder
P = 3         # bottleneck size (the `p` argument of AE.__init__)


def _round_up(n, m):
    return ((n + m - 1) // m) * m


def _ae_kernel(xT_ref,
               w1t_ref, b1t_ref,     # encoder Linear(7, 21), transposed
               w23t_ref, b23t_ref,   # fused Linear(21, p) @ Linear(p, 21)
               w4t_ref, b4t_ref,     # decoder Linear(21, 7), transposed
               o_ref):
    # x^T tile: (7, block_b) -- batch on the lane axis (lane-dense).
    xT = xT_ref[...]

    # encoder Linear(7,21) + ReLU              -> (21, block_b)
    h = jnp.dot(w1t_ref[...], xT, preferred_element_type=jnp.float32) + b1t_ref[...]
    h = jnp.maximum(h, 0.0)

    # fused Linear(21,p)->Linear(p,21) + ReLU  -> (21, block_b)
    d = jnp.dot(w23t_ref[...], h, preferred_element_type=jnp.float32) + b23t_ref[...]
    d = jnp.maximum(d, 0.0)

    # decoder Linear(21,7) + final ReLU        -> (7, block_b)
    y = jnp.dot(w4t_ref[...], d, preferred_element_type=jnp.float32) + b4t_ref[...]
    y = jnp.maximum(y, 0.0)

    o_ref[...] = y.astype(o_ref.dtype)


@functools.partial(jax.jit, static_argnames=("block_b",))
def ae_forward(x, params, *, block_b=2048):
    """Fused AE forward pass. x: (B, 7) float32 -> (B, 7) float32."""
    B, d_in = x.shape
    assert d_in == D_IN

    w1, b1, w2, b2, w3, b3, w4, b4 = params

    # --- one-time parameter packing for the lane-dense (features x batch) layout
    w1t = w1.T                       # (21, 7)
    b1t = b1.T                       # (21, 1)
    w23t = (w2 @ w3).T               # (21, 21)  -- exact fusion (no ReLU between)
    b23t = (b2 @ w3 + b3).T          # (21, 1)
    w4t = w4.T                       # (7, 21)
    b4t = b4.T                       # (7, 1)

    # --- tile / pad the batch (lane) axis to a multiple of 128
    bb = min(_round_up(block_b, 128), _round_up(B, 128))
    Bp = _round_up(B, bb)
    xT = jnp.pad(x, ((0, Bp - B), (0, 0))).T   # (7, Bp), lane-dense

    def rep(a):  # weights/biases: whole (tiny) array, resident for every tile
        return pl.BlockSpec(a.shape, lambda i: (0, 0))

    yT = pl.pallas_call(
        _ae_kernel,
        out_shape=jax.ShapeDtypeStruct((D_IN, Bp), x.dtype),
        grid_spec=pltpu.PrefetchScalarGridSpec(
            num_scalar_prefetch=0,
            grid=(Bp // bb,),
            in_specs=[
                pl.BlockSpec((D_IN, bb), lambda i: (0, i)),   # x^T tile
                rep(w1t), rep(b1t),
                rep(w23t), rep(b23t),
                rep(w4t), rep(b4t),
            ],
            out_specs=pl.BlockSpec((D_IN, bb), lambda i: (0, i)),
        ),
        compiler_params=pltpu.CompilerParams(
            dimension_semantics=("parallel",)),
    )(xT, w1t, b1t, w23t, b23t, w4t, b4t)

    return yT[:, :B].T   # back to (B, 7)


def init_params(key, p=P):
    """Deterministic init mimicking PyTorch's default Linear init
    (uniform +/- 1/sqrt(fan_in)). Weights are stored as (in, out)."""
    def linear(key, fan_in, fan_out):
        kw, kb = jax.random.split(key)
        bound = 1.0 / jnp.sqrt(fan_in)
        w = jax.random.uniform(kw, (fan_in, fan_out), jnp.float32, -bound, bound)
        b = jax.random.uniform(kb, (1, fan_out), jnp.float32, -bound, bound)
        return w, b

    k1, k2, k3, k4 = jax.random.split(key, 4)
    w1, b1 = linear(k1, D_IN, D_HID)   # encoder Linear(7, 21)
    w2, b2 = linear(k2, D_HID, p)      # encoder Linear(21, p)
    w3, b3 = linear(k3, p, D_HID)      # decoder Linear(p, 21)
    w4, b4 = linear(k4, D_HID, D_IN)   # decoder Linear(21, 7)
    return (w1, b1, w2, b2, w3, b3, w4, b4)


def ae_reference(x, params):
    """Pure-JAX reference of the same forward pass (unfused, for verification)."""
    w1, b1, w2, b2, w3, b3, w4, b4 = params
    h = jnp.maximum(x @ w1 + b1, 0.0)
    z = h @ w2 + b2
    d = jnp.maximum(z @ w3 + b3, 0.0)
    return jnp.maximum(d @ w4 + b4, 0.0)


if __name__ == "__main__":
    key = jax.random.PRNGKey(0)
    k_params, k_x = jax.random.split(key)

    params = init_params(k_params, p=P)

    # B deliberately not a multiple of 128 to exercise the pad/unpad path.
    B = 300
    x = jax.random.normal(k_x, (B, D_IN), dtype=jnp.float32)

    out = jax.block_until_ready(ae_forward(x, params))

    ref = ae_reference(x, params)
    assert out.shape == (B, D_IN), out.shape
    # atol loosened to 1e-4: fusing W2@W3 is mathematically exact but changes fp rounding.
    assert jnp.allclose(out, ref, atol=1e-4, rtol=1e-4), "mismatch vs reference"

    print("KERNEL_OK")
</pallas_src>

<mosaic_0001>
module attributes {stable_mosaic.version = 11 : i64} {
  func.func @_ae_kernel(%arg0: i32, %arg1: memref<7x384xf32, #tpu.memory_space<vmem>>, %arg2: memref<21x7xf32, #tpu.memory_space<vmem>>, %arg3: memref<21x1xf32, #tpu.memory_space<vmem>>, %arg4: memref<21x21xf32, #tpu.memory_space<vmem>>, %arg5: memref<21x1xf32, #tpu.memory_space<vmem>>, %arg6: memref<7x21xf32, #tpu.memory_space<vmem>>, %arg7: memref<7x1xf32, #tpu.memory_space<vmem>>, %arg8: memref<7x384xf32, #tpu.memory_space<vmem>>) attributes {dimension_semantics = [#tpu.dimension_semantics<parallel>], iteration_bounds = array<i64: 1>, scalar_prefetch = 0 : i64, scratch_operands = 0 : i64, tpu.core_type = #tpu.core_type<tc>, window_params = [{transform_indices = @transform_0, window_bounds = array<i64: 7, 384>}, {pipeline_mode = #tpu.pipeline_mode<synchronous>, transform_indices = @transform_1, window_bounds = array<i64: 21, 7>}, {pipeline_mode = #tpu.pipeline_mode<synchronous>, transform_indices = @transform_2, window_bounds = array<i64: 21, 1>}, {pipeline_mode = #tpu.pipeline_mode<synchronous>, transform_indices = @transform_3, window_bounds = array<i64: 21, 21>}, {pipeline_mode = #tpu.pipeline_mode<synchronous>, transform_indices = @transform_4, window_bounds = array<i64: 21, 1>}, {pipeline_mode = #tpu.pipeline_mode<synchronous>, transform_indices = @transform_5, window_bounds = array<i64: 7, 21>}, {pipeline_mode = #tpu.pipeline_mode<synchronous>, transform_indices = @transform_6, window_bounds = array<i64: 7, 1>}, {transform_indices = @transform_7, window_bounds = array<i64: 7, 384>}]} {
    %c0 = arith.constant 0 : index
    %c0_0 = arith.constant 0 : index
    %0 = vector.load %arg1[%c0, %c0_0] : memref<7x384xf32, #tpu.memory_space<vmem>>, vector<7x384xf32>
    %c0_1 = arith.constant 0 : index
    %c0_2 = arith.constant 0 : index
    %1 = vector.load %arg2[%c0_1, %c0_2] : memref<21x7xf32, #tpu.memory_space<vmem>>, vector<21x7xf32>
    %cst = arith.constant dense<0.000000e+00> : vector<21x384xf32>
    %2 = tpu.matmul %1, %0, %cst {dimension_numbers = #tpu.dot_dimension_numbers<[1], [0], [0], [1], [0, 0, 1, 1], [], []>} : vector<21x7xf32>, vector<7x384xf32>, vector<21x384xf32> -> vector<21x384xf32>
    %c0_3 = arith.constant 0 : index
    %c0_4 = arith.constant 0 : index
    %3 = vector.load %arg3[%c0_3, %c0_4] : memref<21x1xf32, #tpu.memory_space<vmem>>, vector<21x1xf32>
    %4 = vector.broadcast %3 : vector<21x1xf32> to vector<21x384xf32>
    %5 = arith.addf %2, %4 : vector<21x384xf32>
    %cst_5 = arith.constant 0.000000e+00 : f32
    %6 = vector.broadcast %cst_5 : f32 to vector<21x384xf32>
    %7 = arith.maximumf %5, %6 : vector<21x384xf32>
    %c0_6 = arith.constant 0 : index
    %c0_7 = arith.constant 0 : index
    %8 = vector.load %arg4[%c0_6, %c0_7] : memref<21x21xf32, #tpu.memory_space<vmem>>, vector<21x21xf32>
    %cst_8 = arith.constant dense<0.000000e+00> : vector<21x384xf32>
    %9 = tpu.matmul %8, %7, %cst_8 {dimension_numbers = #tpu.dot_dimension_numbers<[1], [0], [0], [1], [0, 0, 1, 1], [], []>} : vector<21x21xf32>, vector<21x384xf32>, vector<21x384xf32> -> vector<21x384xf32>
    %c0_9 = arith.constant 0 : index
    %c0_10 = arith.constant 0 : index
    %10 = vector.load %arg5[%c0_9, %c0_10] : memref<21x1xf32, #tpu.memory_space<vmem>>, vector<21x1xf32>
    %11 = vector.broadcast %10 : vector<21x1xf32> to vector<21x384xf32>
    %12 = arith.addf %9, %11 : vector<21x384xf32>
    %cst_11 = arith.constant 0.000000e+00 : f32
    %13 = vector.broadcast %cst_11 : f32 to vector<21x384xf32>
    %14 = arith.maximumf %12, %13 : vector<21x384xf32>
    %c0_12 = arith.constant 0 : index
    %c0_13 = arith.constant 0 : index
    %15 = vector.load %arg6[%c0_12, %c0_13] : memref<7x21xf32, #tpu.memory_space<vmem>>, vector<7x21xf32>
    %cst_14 = arith.constant dense<0.000000e+00> : vector<7x384xf32>
    %16 = tpu.matmul %15, %14, %cst_14 {dimension_numbers = #tpu.dot_dimension_numbers<[1], [0], [0], [1], [0, 0, 1, 1], [], []>} : vector<7x21xf32>, vector<21x384xf32>, vector<7x384xf32> -> vector<7x384xf32>
    %c0_15 = arith.constant 0 : index
    %c0_16 = arith.constant 0 : index
    %17 = vector.load %arg7[%c0_15, %c0_16] : memref<7x1xf32, #tpu.memory_space<vmem>>, vector<7x1xf32>
    %18 = vector.broadcast %17 : vector<7x1xf32> to vector<7x384xf32>
    %19 = arith.addf %16, %18 : vector<7x384xf32>
    %cst_17 = arith.constant 0.000000e+00 : f32
    %20 = vector.broadcast %cst_17 : f32 to vector<7x384xf32>
    %21 = arith.maximumf %19, %20 : vector<7x384xf32>
    %c0_18 = arith.constant 0 : index
    %c0_19 = arith.constant 0 : index
    %22 = vector.load %arg8[%c0_18, %c0_19] : memref<7x384xf32, #tpu.memory_space<vmem>>, vector<7x384xf32>
    tpu.vector_store %arg8[%c0_18, %c0_19], %21 {strides = array<i32>} : memref<7x384xf32, #tpu.memory_space<vmem>>, vector<7x384xf32>,
    return
  }
  func.func @transform_0(%arg0: i32) -> (i32, i32) {
    %c0_i32 = arith.constant 0 : i32
    %c0_i32_0 = arith.constant 0 : i32
    return %c0_i32, %arg0 : i32, i32
  }
  func.func @transform_1(%arg0: i32) -> (i32, i32) {
    %c0_i32 = arith.constant 0 : i32
    %c0_i32_0 = arith.constant 0 : i32
    %c0_i32_1 = arith.constant 0 : i32
    return %c0_i32, %c0_i32_0 : i32, i32
  }
  func.func @transform_2(%arg0: i32) -> (i32, i32) {
    %c0_i32 = arith.constant 0 : i32
    %c0_i32_0 = arith.constant 0 : i32
    %c0_i32_1 = arith.constant 0 : i32
    return %c0_i32, %c0_i32_0 : i32, i32
  }
  func.func @transform_3(%arg0: i32) -> (i32, i32) {
    %c0_i32 = arith.constant 0 : i32
    %c0_i32_0 = arith.constant 0 : i32
    %c0_i32_1 = arith.constant 0 : i32
    return %c0_i32, %c0_i32_0 : i32, i32
  }
  func.func @transform_4(%arg0: i32) -> (i32, i32) {
    %c0_i32 = arith.constant 0 : i32
    %c0_i32_0 = arith.constant 0 : i32
    %c0_i32_1 = arith.constant 0 : i32
    return %c0_i32, %c0_i32_0 : i32, i32
  }
  func.func @transform_5(%arg0: i32) -> (i32, i32) {
    %c0_i32 = arith.constant 0 : i32
    %c0_i32_0 = arith.constant 0 : i32
    %c0_i32_1 = arith.constant 0 : i32
    return %c0_i32, %c0_i32_0 : i32, i32
  }
  func.func @transform_6(%arg0: i32) -> (i32, i32) {
    %c0_i32 = arith.constant 0 : i32
    %c0_i32_0 = arith.constant 0 : i32
    %c0_i32_1 = arith.constant 0 : i32
    return %c0_i32, %c0_i32_0 : i32, i32
  }
  func.func @transform_7(%arg0: i32) -> (i32, i32) {
    %c0_i32 = arith.constant 0 : i32
    %c0_i32_0 = arith.constant 0 : i32
    return %c0_i32, %arg0 : i32, i32
  }
}

</mosaic_0001>

<bundles_post_ra>
// kernel: ae_forward.1
= control target key start
LH: loop header
LB: loop body
LE: loop exit
PB: predicated region body
PF: predicated region fallthrough
CT: control target
= control target key end

     0   :  { %vm60_vm0 = vcmask 1046528   ;;  %vm50_vm1 = vcmask 56320   ;;  %v717_v0 = vmov 0.0   ;;  %vm718_vm2 = vmmov 0   ;;  %s865_s0 = inlined_call_operand.vmem [shape: f32[7,384], index: 0, kind: input, shape index: {}]   ;;  %s866_s1 = inlined_call_operand.vmem [shape: f32[21,7], index: 1, kind: input, shape index: {}]   ;;  %s867_s2 = inlined_call_operand.vmem [shape: f32[21,1], index: 2, kind: input, shape index: {}]   ;;  %s868_s4 = inlined_call_operand.vmem [shape: f32[21,1], index: 4, kind: input, shape index: {}]   ;;  %s869_s6 = inlined_call_operand.vmem [shape: f32[7,1], index: 6, kind: input, shape index: {}]   ;;  %s870_s3 = inlined_call_operand.vmem [shape: f32[21,21], index: 3, kind: input, shape index: {}]   ;;  %s871_s5 = inlined_call_operand.vmem [shape: f32[7,21], index: 5, kind: input, shape index: {}]   ;;  %s872_s7 = inlined_call_operand.vmem [shape: f32[7,384], index: 7, kind: output, shape index: {}]  }
   0x1   :  { %662 = vmatprep.subr.mxu1 %v717_v0  ;;  %v27_v1 = vld [vmem:[%s865_s0 + $0x8] sm:$0x7f]  ;;  %v28_v2 = vld [vmem:[%s865_s0 + $0x10] sm:$0x7f]  ;;  %664 = vmatprep.mubr.msk.f32.mxu1 %vm718_vm2, %v717_v0  ;;  %v26_v3 = vld [vmem:[%s865_s0] sm:$0x7f] }
   0x2   :  { %625 = vmatprep.subr.msk.mxu0 %vm60_vm0, %v27_v1  ;;  %663 = vmatpush3.msk.msra.mxu1 %vm60_vm0, %v28_v2  ;;  %v29_v4 = vld [vmem:[%s866_s1] sm:$0xff]  ;;  %v34_v6 = vld [vmem:[%s867_s2 + $0x10] sm:$0x1f]  ;;  %v30_v7 = vld [vmem:[%s866_s1 + $0x8] sm:$0xff]  ;;  %v719_v8 = vmov 0   ;;  %v720_v15 = vmov 0.0|0.0  }
   0x3   :  { %626 = vmatpush1.msk.msra.mxu0 %vm60_vm0, %v26_v3  ;;  %134 = vmatprep.mubr.f32.mxu0 %v717_v0  ;;  %v32_v5 = vld [vmem:[%s867_s2] sm:$0xff]  ;;  %v33_v9 = vld [vmem:[%s867_s2 + $0x8] sm:$0xff]  ;;  %v31_v11 = vld [vmem:[%s866_s1 + $0x10] sm:$0x1f]  ;;  %vm273_vm3 = vcmask 1044480   ;;  %vm263_vm4 = vcmask 171008  }
   0x4   :  { %665 = vmatmul.mubr.msk.f32.vlgmr.msra.gmra.mrb[0].mxu1 %vm50_vm1, %v29_v4  ;;  %627 = vmatmul.mubr.msk.f32.vlgmr.msra.gmra.mrb[0].mxu0 %vm50_vm1, %v29_v4  ;;  %v245_v10 = vld [vmem:[%s868_s4] sm:$0xff]  ;;  %v246_v12 = vld [vmem:[%s868_s4 + $0x8] sm:$0xff]  ;;  %v247_v13 = vld [vmem:[%s868_s4 + $0x10] sm:$0x1f] }
   0x5   :  { %667 = vmatprep.mubr.msk.f32.mxu1 %vm718_vm2, %v717_v0  ;;  %140 = vmatprep.mubr.f32.mxu0 %v717_v0  ;;  %v456_v14 = vld [vmem:[%s869_s6] sm:$0x7f]  ;;  %v243_v53 = vld [vmem:[%s870_s3 + $0x8] sm:$0xff]  ;;  %v244_v54 = vld [vmem:[%s870_s3 + $0x10] sm:$0x1f] }
   0x6   :  { %715 = vset.pattern.permute.xlu0 %v719_v8  ;;  %716 = vset.pattern.permute.xlu1 %v719_v8  ;;  %v242_v51 = vld [vmem:[%s870_s3] sm:$0xff] }
   0x7   :  { %37 = vperm.xlu0 %715, %v32_v5   ;;  %47 = vperm.xlu1 %716, %v34_v6  }
   0x8   :  { %668 = vmatmul.mubr.msk.f32.gmra.mrb[2].mxu1 %vm50_vm1, %v30_v7  ;;  %628 = vmatmul.mubr.msk.f32.gmra.mrb[2].mxu0 %vm50_vm1, %v30_v7 }
   0x9   :  { %146 = vmatprep.mubr.f32.mxu0 %v717_v0  ;;  %670 = vmatprep.mubr.msk.f32.mxu1 %vm718_vm2, %v717_v0 }
   0xa   :  { %701 = vmatprep.subr.bf16.mxu1 %v720_v15 }
   0xb   :  { %42 = vperm.xlu0 %715, %v33_v9   ;;  %250 = vperm.xlu1 %716, %v245_v10  }
   0xc   :  { %629 = vmatmul.mubr.msk.f32.gmra.mrb[4].mxu0 %vm50_vm1, %v31_v11  ;;  %671 = vmatmul.mubr.msk.f32.gmra.mrb[4].mxu1 %vm50_vm1, %v31_v11 }
   0xd   :  { %679 = vmatprep.mubr.msk.f32.mxu1 %vm718_vm2, %v717_v0  ;;  %347 = vmatprep.mubr.f32.mxu0 %v717_v0 }
   0xf   :  { %255 = vperm.xlu0 %715, %v246_v12   ;;  %260 = vperm.xlu1 %716, %v247_v13  }
  0x13   :  { %459 = vperm.xlu0 %715, %v456_v14  }
  0x86   :  { %v38_v16 = vpop.permute.xlu0 %37  ;;  %v48_v34 = vpop.permute.xlu1 %47 }
  0x8a   :  { %v43_v21 = vpop.permute.xlu0 %42  ;;  %v251_v57 = vpop.permute.xlu1 %250 }
  0x8e   :  { %v256_v61 = vpop.permute.xlu0 %255  ;;  %v261_v9 = vpop.permute.xlu1 %260 }
  0xd7   :  { %v136_v17 = vpop.f32.mrb[0].mxu0  ;;  %v219_v18 = vpop.f32.mrb[0].mxu1 }
  0xd8   :  { %v138_v19 = vpop.f32.mrb[1].mxu0  ;;  %v666_v20 = vpop.f32.mrb[1].mxu1  ;;  %v137_v22 = vadd.f32 %v136_v17, %v38_v16  ;;  %v220_v23 = vadd.f32 %v219_v18, %v38_v16 }
  0xd9   :  { %v139_v24 = vadd.f32 %v138_v19, %v38_v16 }
  0xda   :  { %v233_v32 = vmax.f32 %v137_v22, 0.0  ;;  %v235_v33 = vmax.f32 %v220_v23, 0.0 }
  0xdb   :  { %v224_v25 = vpop.f32.mrb[2].mxu1  ;;  %v142_v26 = vpop.f32.mrb[2].mxu0  ;;  %v234_v37 = vmax.f32 %v139_v24, 0.0 }
  0xdc   :  { %v225_v27 = vadd.f32 %v224_v25, %v43_v21  ;;  %v143_v28 = vadd.f32 %v142_v26, %v43_v21  ;;  %v144_v29 = vpop.f32.mrb[3].mxu0  ;;  %v669_v30 = vpop.f32.mrb[3].mxu1  ;;  %v455_v26 = vld [vmem:[%s871_s5] sm:$0x7f] }
  0xdd   :  { %v145_v31 = vadd.f32 %v144_v29, %v43_v21 }
  0xde   :  { %v238_v35 = vmax.f32 %v225_v27, 0.0  ;;  %v236_v36 = vmax.f32 %v143_v28, 0.0 }
  0xdf   :  { %v237_v38 = vmax.f32 %v145_v31, 0.0  ;;  %v148_v39 = vpop.f32.mrb[4].mxu0  ;;  %v229_v40 = vpop.f32.mrb[4].mxu1 }
  0xe0   :  { %v702_v41 = vpack.c.bf16 %v238_v35, %v235_v33  ;;  %v699_v42 = vpack.c.bf16 %v236_v36, %v233_v32  ;;  %v230_v43 = vadd.f32 %v229_v40, %v48_v34  ;;  %v150_v44 = vpop.f32.mrb[5].mxu0  ;;  %v672_v45 = vpop.f32.mrb[5].mxu1  ;;  %v149_v48 = vadd.f32 %v148_v39, %v48_v34 }
  0xe1   :  { %v697_v46 = vpack.c.bf16 %v237_v38, %v234_v37  ;;  %v151_v47 = vadd.f32 %v150_v44, %v48_v34 }
  0xe2   :  { %v241_v49 = vmax.f32 %v230_v43, 0.0  ;;  %703 = vmatpush3.bf16.msra.mxu1 %v702_v41  ;;  %v239_v52 = vmax.f32 %v149_v48, 0.0 }
  0xe3   :  { %v240_v50 = vmax.f32 %v151_v47, 0.0  ;;  %698 = vmatprep.subr.bf16.mxu0 %v697_v46  ;;  %677 = vmatprep.subr.mxu1 %v717_v0 }
  0xe4   :  { %700 = vmatpush1.bf16.msra.mxu0 %v699_v42 }
  0xe5   :  { %634 = vmatprep.subr.msk.mxu0 %vm273_vm3, %v240_v50 }
  0xe6   :  { %678 = vmatpush3.msk.msra.mxu1 %vm273_vm3, %v241_v49 }
  0xe7   :  { %680 = vmatmul.mubr.msk.f32.vlgmr.msra.gmra.mrb[6].mxu1 %vm263_vm4, %v242_v51  ;;  %708 = vmatprep.subr.bf16.mxu1 %v720_v15 }
  0xe8   :  { %635 = vmatpush1.msk.msra.mxu0 %vm273_vm3, %v239_v52  ;;  %682 = vmatprep.mubr.msk.f32.mxu1 %vm718_vm2, %v717_v0 }
  0xe9   :  { %636 = vmatmul.mubr.msk.f32.vlgmr.msra.gmra.mrb[6].mxu0 %vm263_vm4, %v242_v51 }
  0xea   :  { %353 = vmatprep.mubr.f32.mxu0 %v717_v0 }
  0xeb   :  { %683 = vmatmul.mubr.msk.f32.gmra.mrb[8].mxu1 %vm263_vm4, %v243_v53 }
  0xec   :  { %685 = vmatprep.mubr.msk.f32.mxu1 %vm718_vm2, %v717_v0 }
  0xed   :  { %637 = vmatmul.mubr.msk.f32.gmra.mrb[8].mxu0 %vm263_vm4, %v243_v53 }
  0xee   :  { %359 = vmatprep.mubr.f32.mxu0 %v717_v0 }
  0xef   :  { %686 = vmatmul.mubr.msk.f32.gmra.mrb[10].mxu1 %vm263_vm4, %v244_v54 }
  0xf0   :  { %694 = vmatprep.mubr.msk.f32.mxu1 %vm718_vm2, %v717_v0 }
  0xf1   :  { %638 = vmatmul.mubr.msk.f32.gmra.mrb[10].mxu0 %vm263_vm4, %v244_v54 }
  0xf2   :  { %538 = vmatprep.mubr.f32.mxu0 %v717_v0 }
 0x1ba   :  { %v432_v55 = vpop.f32.mrb[6].mxu1 }
 0x1bb   :  { %v681_v56 = vpop.f32.mrb[7].mxu1  ;;  %v433_v59 = vadd.f32 %v432_v55, %v251_v57 }
 0x1bc   :  { %v349_v58 = vpop.f32.mrb[6].mxu0 }
 0x1bd   :  { %v351_v60 = vpop.f32.mrb[7].mxu0  ;;  %v350_v63 = vadd.f32 %v349_v58, %v251_v57  ;;  %v448_v5 = vmax.f32 %v433_v59, 0.0 }
 0x1be   :  { %v437_v62 = vpop.f32.mrb[8].mxu1  ;;  %v352_v3 = vadd.f32 %v351_v60, %v251_v57 }
 0x1bf   :  { %v438_v1 = vadd.f32 %v437_v62, %v256_v61  ;;  %v684_v2 = vpop.f32.mrb[9].mxu1  ;;  %v446_v12 = vmax.f32 %v350_v63, 0.0 }
 0x1c0   :  { %v355_v4 = vpop.f32.mrb[8].mxu0  ;;  %v447_v17 = vmax.f32 %v352_v3, 0.0 }
 0x1c1   :  { %v451_v6 = vmax.f32 %v438_v1, 0.0  ;;  %v356_v7 = vadd.f32 %v355_v4, %v256_v61  ;;  %v357_v8 = vpop.f32.mrb[9].mxu0 }
 0x1c2   :  { %v358_v10 = vadd.f32 %v357_v8, %v256_v61  ;;  %v442_v11 = vpop.f32.mrb[10].mxu1 }
 0x1c3   :  { %v709_v13 = vpack.c.bf16 %v451_v6, %v448_v5  ;;  %v449_v14 = vmax.f32 %v356_v7, 0.0  ;;  %v443_v15 = vadd.f32 %v442_v11, %v261_v9  ;;  %v687_v16 = vpop.f32.mrb[11].mxu1 }
 0x1c4   :  { %v450_v18 = vmax.f32 %v358_v10, 0.0  ;;  %v361_v19 = vpop.f32.mrb[10].mxu0 }
 0x1c5   :  { %v706_v20 = vpack.c.bf16 %v449_v14, %v446_v12  ;;  %710 = vmatpush3.bf16.msra.mxu1 %v709_v13  ;;  %v363_v21 = vpop.f32.mrb[11].mxu0  ;;  %v454_v24 = vmax.f32 %v443_v15, 0.0  ;;  %v362_v25 = vadd.f32 %v361_v19, %v261_v9 }
 0x1c6   :  { %v704_v22 = vpack.c.bf16 %v450_v18, %v447_v17  ;;  %v364_v23 = vadd.f32 %v363_v21, %v261_v9  ;;  %692 = vmatprep.subr.mxu1 %v717_v0  ;;  %v460_v0 = vpop.permute.xlu0 %459 }
 0x1c7   :  { %v452_v28 = vmax.f32 %v362_v25, 0.0 }
 0x1c8   :  { %v453_v27 = vmax.f32 %v364_v23, 0.0  ;;  %705 = vmatprep.subr.bf16.mxu0 %v704_v22 }
 0x1c9   :  { %693 = vmatpush3.msk.msra.mxu1 %vm273_vm3, %v454_v24  ;;  %707 = vmatpush1.bf16.msra.mxu0 %v706_v20 }
 0x1ca   :  { %695 = vmatmul.mubr.msk.f32.vlgmr.msra.gmra.mrb[12].mxu1 %vm263_vm4, %v455_v26  ;;  %643 = vmatprep.subr.msk.mxu0 %vm273_vm3, %v453_v27 }
 0x1cd   :  { %644 = vmatpush1.msk.msra.mxu0 %vm273_vm3, %v452_v28 }
 0x1ce   :  { %645 = vmatmul.mubr.msk.f32.vlgmr.msra.gmra.mrb[12].mxu0 %vm263_vm4, %v455_v26 }
 0x29d   :  { %v611_v29 = vpop.f32.mrb[12].mxu1 }
 0x29e   :  { %v612_v30 = vadd.f32 %v611_v29, %v460_v0  ;;  %v696_v31 = vpop.f32.mrb[13].mxu1 }
 0x2a0   :  { %v617_v32 = vmax.f32 %v612_v30, 0.0 }
 0x2a1   :  { %v540_v33 = vpop.f32.mrb[12].mxu0 }
 0x2a2   :  { %620 = vst [vmem:[%s872_s7 + $0x10] sm:$0x7f] %v617_v32  ;;  %v541_v34 = vadd.f32 %v540_v33, %v460_v0  ;;  %v542_v35 = vpop.f32.mrb[13].mxu0 }
 0x2a3   :  { %v543_v36 = vadd.f32 %v542_v35, %v460_v0 }
 0x2a4   :  { %v615_v37 = vmax.f32 %v541_v34, 0.0 }
 0x2a5   :  { %v616_v38 = vmax.f32 %v543_v36, 0.0 }
 0x2a6   :  { %618 = vst [vmem:[%s872_s7] sm:$0x7f] %v615_v37 }
 0x2a7   :  { %619 = vst [vmem:[%s872_s7 + $0x8] sm:$0x7f] %v616_v38 }

</bundles_post_ra>
